<compile_context>
chip_gen: v6e
topology: v6e:2x2x1
jax: 0.10.0
libtpu: 0.0.40
codegen_flags: <defaults>
</compile_context>

<pallas_src>
import jax
import jax.numpy as jnp
from jax.experimental import pallas as pl
from jax.experimental.pallas import tpu as pltpu


def _round_up(x, m):
    return ((x + m - 1) // m) * m


def _seq_kernel(x_ref, w1_ref, b1_ref, w2_ref, b2_ref, o_ref):
    # x_ref:  (10, TILE_B)   lane-dense batch tile
    # w1/w2:  (10, 10)       PyTorch (out, in) layout
    # b1/b2:  (10, 1)        column vectors, broadcast over batch lanes
    x = x_ref[...]
    # First linear + ReLU:  H = relu(W1 @ X + b1)   (MXU matmul, f32 acc; VPU relu)
    h = jnp.dot(w1_ref[...], x, preferred_element_type=jnp.float32)
    h = jnp.maximum(h + b1_ref[...], 0.0)
    # Second linear + Sigmoid:  Y = sigmoid(W2 @ H + b2)   (exp on the EUP)
    y = jnp.dot(w2_ref[...], h.astype(w2_ref.dtype),
                preferred_element_type=jnp.float32)
    y = y + b2_ref[...]
    o_ref[...] = jax.nn.sigmoid(y).astype(o_ref.dtype)


def seq_forward(x, w1, b1, w2, b2, *, tile_b=8192):
    """Forward pass of the Seq module.

    x:  (B, 10) float32 — same layout as the PyTorch module's input.
    w1, w2: (10, 10) float32 in PyTorch's (out_features, in_features) layout.
    b1, b2: (10, 1) float32 column biases.
    Returns (B, 10) float32.
    """
    B, F_in = x.shape
    F_hid = w1.shape[0]
    F_out = w2.shape[0]

    # Lane-dense layout: features on the sublane axis, batch on the lane axis.
    xt = x.T  # (10, B)

    # Batch tile: multiple of 128 lanes, capped so tiny batches use one block.
    tb = min(tile_b, _round_up(B, 128))
    b_pad = _round_up(B, tb)
    if b_pad != B:
        xt = jnp.pad(xt, ((0, 0), (0, b_pad - B)))

    grid = (b_pad // tb,)

    out_t = pl.pallas_call(
        _seq_kernel,
        out_shape=jax.ShapeDtypeStruct((F_out, b_pad), x.dtype),
        grid_spec=pltpu.PrefetchScalarGridSpec(
            num_scalar_prefetch=0,
            grid=grid,
            in_specs=[
                # x tile: streamed / double-buffered across the batch grid.
                pl.BlockSpec((F_in, tb), lambda i: (0, i)),
                # Weights & biases: constant block index -> resident in VMEM.
                pl.BlockSpec((F_hid, F_in), lambda i: (0, 0)),
                pl.BlockSpec((F_hid, 1), lambda i: (0, 0)),
                pl.BlockSpec((F_out, F_hid), lambda i: (0, 0)),
                pl.BlockSpec((F_out, 1), lambda i: (0, 0)),
            ],
            out_specs=pl.BlockSpec((F_out, tb), lambda i: (0, i)),
        ),
        compiler_params=pltpu.CompilerParams(
            dimension_semantics=("parallel",),
        ),
    )(xt, w1, b1, w2, b2)

    # Drop batch padding and return to the caller's (B, 10) layout.
    return out_t[:, :B].T


def init_params(key, in_features=10, out_features=10):
    """Deterministic init mirroring torch.nn.Linear's default U(-1/sqrt(in), 1/sqrt(in)).

    Weights are kept in PyTorch's (out, in) layout; biases are (out, 1) columns.
    """
    k1, k2, k3, k4 = jax.random.split(key, 4)
    bound = 1.0 / jnp.sqrt(jnp.float32(in_features))
    w1 = jax.random.uniform(k1, (out_features, in_features), jnp.float32, -bound, bound)
    b1 = jax.random.uniform(k2, (out_features, 1), jnp.float32, -bound, bound)
    w2 = jax.random.uniform(k3, (out_features, in_features), jnp.float32, -bound, bound)
    b2 = jax.random.uniform(k4, (out_features, 1), jnp.float32, -bound, bound)
    return w1, b1, w2, b2


def _reference(x, w1, b1, w2, b2):
    # Plain-JAX reference with the exact PyTorch semantics: x @ W.T + b.
    h = jnp.maximum(x @ w1.T + b1.T, 0.0)
    return jax.nn.sigmoid(h @ w2.T + b2.T)


if __name__ == "__main__":
    key = jax.random.PRNGKey(0)
    kx, kx2, kp = jax.random.split(key, 3)

    w1, b1, w2, b2 = init_params(kp)

    # Small-batch case (matches the original test's tiny input).
    B = 8
    x = jax.random.normal(kx, (B, 10), dtype=jnp.float32)
    out = seq_forward(x, w1, b1, w2, b2)
    jax.block_until_ready(out)
    ref = _reference(x, w1, b1, w2, b2)
    assert out.shape == (B, 10)
    assert jnp.allclose(out, ref, atol=1e-5, rtol=1e-5)

    # Multi-tile case: exercises the batch grid + resident weights path.
    B2 = 384
    x2 = jax.random.normal(kx2, (B2, 10), dtype=jnp.float32)
    out2 = seq_forward(x2, w1, b1, w2, b2, tile_b=128)  # grid of 3 batch tiles
    jax.block_until_ready(out2)
    ref2 = _reference(x2, w1, b1, w2, b2)
    assert out2.shape == (B2, 10)
    assert jnp.allclose(out2, ref2, atol=1e-5, rtol=1e-5)

    print("KERNEL_OK")
</pallas_src>

<mosaic_0001>
module attributes {stable_mosaic.version = 11 : i64} {
  func.func @_seq_kernel(%arg0: i32, %arg1: memref<10x128xf32, #tpu.memory_space<vmem>>, %arg2: memref<10x10xf32, #tpu.memory_space<vmem>>, %arg3: memref<10x1xf32, #tpu.memory_space<vmem>>, %arg4: memref<10x10xf32, #tpu.memory_space<vmem>>, %arg5: memref<10x1xf32, #tpu.memory_space<vmem>>, %arg6: memref<10x128xf32, #tpu.memory_space<vmem>>) attributes {dimension_semantics = [#tpu.dimension_semantics<parallel>], iteration_bounds = array<i64: 1>, scalar_prefetch = 0 : i64, scratch_operands = 0 : i64, tpu.core_type = #tpu.core_type<tc>, window_params = [{transform_indices = @transform_0, window_bounds = array<i64: 10, 128>}, {pipeline_mode = #tpu.pipeline_mode<synchronous>, transform_indices = @transform_1, window_bounds = array<i64: 10, 10>}, {pipeline_mode = #tpu.pipeline_mode<synchronous>, transform_indices = @transform_2, window_bounds = array<i64: 10, 1>}, {pipeline_mode = #tpu.pipeline_mode<synchronous>, transform_indices = @transform_3, window_bounds = array<i64: 10, 10>}, {pipeline_mode = #tpu.pipeline_mode<synchronous>, transform_indices = @transform_4, window_bounds = array<i64: 10, 1>}, {transform_indices = @transform_5, window_bounds = array<i64: 10, 128>}]} {
    %c0 = arith.constant 0 : index
    %c0_0 = arith.constant 0 : index
    %0 = vector.load %arg1[%c0, %c0_0] : memref<10x128xf32, #tpu.memory_space<vmem>>, vector<10x128xf32>
    %c0_1 = arith.constant 0 : index
    %c0_2 = arith.constant 0 : index
    %1 = vector.load %arg2[%c0_1, %c0_2] : memref<10x10xf32, #tpu.memory_space<vmem>>, vector<10x10xf32>
    %cst = arith.constant dense<0.000000e+00> : vector<10x128xf32>
    %2 = tpu.matmul %1, %0, %cst {dimension_numbers = #tpu.dot_dimension_numbers<[1], [0], [0], [1], [0, 0, 1, 1], [], []>} : vector<10x10xf32>, vector<10x128xf32>, vector<10x128xf32> -> vector<10x128xf32>
    %c0_3 = arith.constant 0 : index
    %c0_4 = arith.constant 0 : index
    %3 = vector.load %arg3[%c0_3, %c0_4] : memref<10x1xf32, #tpu.memory_space<vmem>>, vector<10x1xf32>
    %4 = vector.broadcast %3 : vector<10x1xf32> to vector<10x128xf32>
    %5 = arith.addf %2, %4 : vector<10x128xf32>
    %cst_5 = arith.constant 0.000000e+00 : f32
    %6 = vector.broadcast %cst_5 : f32 to vector<10x128xf32>
    %7 = arith.maximumf %5, %6 : vector<10x128xf32>
    %c0_6 = arith.constant 0 : index
    %c0_7 = arith.constant 0 : index
    %8 = vector.load %arg4[%c0_6, %c0_7] : memref<10x10xf32, #tpu.memory_space<vmem>>, vector<10x10xf32>
    %cst_8 = arith.constant dense<0.000000e+00> : vector<10x128xf32>
    %9 = tpu.matmul %8, %7, %cst_8 {dimension_numbers = #tpu.dot_dimension_numbers<[1], [0], [0], [1], [0, 0, 1, 1], [], []>} : vector<10x10xf32>, vector<10x128xf32>, vector<10x128xf32> -> vector<10x128xf32>
    %c0_9 = arith.constant 0 : index
    %c0_10 = arith.constant 0 : index
    %10 = vector.load %arg5[%c0_9, %c0_10] : memref<10x1xf32, #tpu.memory_space<vmem>>, vector<10x1xf32>
    %11 = vector.broadcast %10 : vector<10x1xf32> to vector<10x128xf32>
    %12 = arith.addf %9, %11 : vector<10x128xf32>
    %13 = arith.negf %12 : vector<10x128xf32>
    %14 = math.exp %13 : vector<10x128xf32>
    %cst_11 = arith.constant 1.000000e+00 : f32
    %15 = vector.broadcast %cst_11 : f32 to vector<10x128xf32>
    %16 = arith.addf %15, %14 : vector<10x128xf32>
    %17 = arith.divf %15, %16 : vector<10x128xf32>
    %c0_12 = arith.constant 0 : index
    %c0_13 = arith.constant 0 : index
    %18 = vector.load %arg6[%c0_12, %c0_13] : memref<10x128xf32, #tpu.memory_space<vmem>>, vector<10x128xf32>
    tpu.vector_store %arg6[%c0_12, %c0_13], %17 {strides = array<i32>} : memref<10x128xf32, #tpu.memory_space<vmem>>, vector<10x128xf32>,
    return
  }
  func.func @transform_0(%arg0: i32) -> (i32, i32) {
    %c0_i32 = arith.constant 0 : i32
    %c0_i32_0 = arith.constant 0 : i32
    return %c0_i32, %arg0 : i32, i32
  }
  func.func @transform_1(%arg0: i32) -> (i32, i32) {
    %c0_i32 = arith.constant 0 : i32
    %c0_i32_0 = arith.constant 0 : i32
    %c0_i32_1 = arith.constant 0 : i32
    return %c0_i32, %c0_i32_0 : i32, i32
  }
  func.func @transform_2(%arg0: i32) -> (i32, i32) {
    %c0_i32 = arith.constant 0 : i32
    %c0_i32_0 = arith.constant 0 : i32
    %c0_i32_1 = arith.constant 0 : i32
    return %c0_i32, %c0_i32_0 : i32, i32
  }
  func.func @transform_3(%arg0: i32) -> (i32, i32) {
    %c0_i32 = arith.constant 0 : i32
    %c0_i32_0 = arith.constant 0 : i32
    %c0_i32_1 = arith.constant 0 : i32
    return %c0_i32, %c0_i32_0 : i32, i32
  }
  func.func @transform_4(%arg0: i32) -> (i32, i32) {
    %c0_i32 = arith.constant 0 : i32
    %c0_i32_0 = arith.constant 0 : i32
    %c0_i32_1 = arith.constant 0 : i32
    return %c0_i32, %c0_i32_0 : i32, i32
  }
  func.func @transform_5(%arg0: i32) -> (i32, i32) {
    %c0_i32 = arith.constant 0 : i32
    %c0_i32_0 = arith.constant 0 : i32
    return %c0_i32, %arg0 : i32, i32
  }
}

</mosaic_0001>

<bundles_post_ra>
// kernel: tpu_custom_call.1
= control target key start
LH: loop header
LB: loop body
LE: loop exit
PB: predicated region body
PF: predicated region fallthrough
CT: control target
= control target key end

     0   :  { %10 = vsyncpa [#allocation3], 0  ;;  %s436_s0 = inlined_call_operand.vmem [shape: f32[10,128], index: 0, kind: input, shape index: {}]   ;;  %s437_s1 = inlined_call_operand.vmem [shape: f32[10,10], index: 1, kind: input, shape index: {}]   ;;  %s438_s2 = inlined_call_operand.vmem [shape: f32[10,1], index: 2, kind: input, shape index: {}]   ;;  %s439_s3 = inlined_call_operand.hbm [shape: f32[10,10], index: 3, kind: input, shape index: {}]   ;;  %s440_s4 = inlined_call_operand.vmem [shape: f32[10,1], index: 4, kind: input, shape index: {}]   ;;  %s441_s5 = inlined_call_operand.hbm [shape: f32[10,128], index: 5, kind: output, shape index: {}]  }
   0x1   :  { %11 = vsyncpa [#allocation4], 0  ;;  %s357_s18 = smov [#allocation2]  }
   0x2   :  { %s23_s19 = sshll.u32 %s357_s18, 4  ;;  %s24_s19 = int_to_ptr.vmem [resolvable:$true] %s23_s19 }
   0x3   :  { %s321_s20 = scalar_lea.vmem %s24_s19, 256  ;;  %p326_p1 = scmp.lt.s32.totalorder %s24_s19, %s24_s19 }
   0x4   :  { %p322_p0 = scmp.ne.s32.totalorder %s24_s19, %s321_s20  ;;  %p327_p2 = scmp.lt.s32.totalorder %s321_s20, %s321_s20 }
   0x6   :  { %p328_p3 = por %p327_p2, %p326_p1 }
   0x8   :  { %p329_p4 = pnand %p328_p3, %p322_p0 }
   0xa   :  { %332 = shalt.err (!%p329_p4)
}
   0xb   :  { %s358_s21 = smov 128   ;;  %s359_s22 = smov 8  }
   0xc   :  { %29 = dma.hbm_to_vmem [thread:$0]  %s439_s3, 256, %s24_s19, [#allocation3], %s358_s21, %s358_s21, %s359_s22  }
   0xd   :  { %353 = dma.done.wait [#allocation3], 256  }
   0xe   :  { %354 = vsyncadd [#allocation3], 4294967040  ;;  %v360_v0 = vmov 0   ;;  %vm58_vm0 = vcmask 1041408   ;;  %vm51_vm1 = vcmask 80896   ;;  %v35_v2 = vld [vmem:[%s436_s0] sm:$0xff] }
   0xf   :  { %303 = vset.pattern.permute.xlu0 %v360_v0  ;;  %304 = vset.pattern.permute.xlu1 %v360_v0  ;;  %v36_v1 = vld [vmem:[%s436_s0 + $0x8] sm:$0x3]  ;;  %v37_v3 = vld [vmem:[%s437_s1] sm:$0xff] }
  0x10   :  { %284 = vmatprep.subr.msk.mxu0 %vm58_vm0, %v36_v1  ;;  %288 = vmatprep.mubr.msk.f32.mxu0 %vm51_vm1, %v37_v3  ;;  %v40_v4 = vld [vmem:[%s438_s2 + $0x8] sm:$0x3]  ;;  %v39_v6 = vld [vmem:[%s438_s2] sm:$0xff]  ;;  %s361_s2 = smov [#allocation5]  }
  0x11   :  { %285 = vmatpush3.msk.msra.mxu0 %vm58_vm0, %v36_v1  ;;  %v38_v5 = vld [vmem:[%s437_s1 + $0x8] sm:$0x3]  ;;  %48 = vperm.xlu0 %303, %v40_v4   ;;  %v139_v7 = vld [vmem:[#allocation2] sm:$0xff] }
  0x12   :  { %286 = vmatprep.subr.mxu0 %v35_v2  ;;  %295 = vmatprep.mubr.msk.f32.mxu1 %vm51_vm1, %v139_v7  ;;  %v141_v8 = vld [vmem:[%s440_s4] sm:$0xff]  ;;  %v142_v9 = vld [vmem:[%s440_s4 + $0x8] sm:$0x3]  ;;  %s256_s4 = sshll.u32 %s361_s2, 4  ;;  %s257_s4 = int_to_ptr.vmem [resolvable:$true] %s256_s4 }
  0x13   :  { %287 = vmatpush3.msra.mxu0 %v35_v2  ;;  %145 = vperm.xlu1 %304, %v141_v8   ;;  %v140_v18 = vld [vmem:[#allocation2 + $0x8] sm:$0x3]  ;;  %s333_s13 = scalar_lea.vmem %s257_s4, 256  ;;  %p338_p6 = scmp.lt.s32.totalorder %s257_s4, %s257_s4 }
  0x14   :  { %289 = vmatmul.mubr.msk.f32.vlgmr.msra.gmra.mxu0 %vm51_vm1, %v38_v5  ;;  %p334_p5 = scmp.ne.s32.totalorder %s257_s4, %s333_s13  ;;  %p339_p7 = scmp.lt.s32.totalorder %s333_s13, %s333_s13 }
  0x15   :  { %43 = vperm.xlu0 %303, %v39_v6  }
  0x16   :  { %p340_p8 = por %p339_p7, %p338_p6 }
  0x17   :  { %150 = vperm.xlu1 %304, %v142_v9  }
  0x18   :  { %p341_p9 = pnand %p340_p8, %p334_p5 }
  0x8c   :  { %v49_v10 = vpop.permute.xlu0 %48 }
  0x8e   :  { %v146_v19 = vpop.permute.xlu1 %145 }
  0x90   :  { %v44_v13 = vpop.permute.xlu0 %43 }
  0x92   :  { %v151_v20 = vpop.permute.xlu1 %150 }
  0xd4   :  { %v290_v11 = vpop.f32.mrf.mxu0 }
  0xd5   :  { %v134_v12 = vadd.f32 %v290_v11, %v49_v10 }
  0xd6   :  { %v128_v14 = vpop.f32.mrf.mxu0 }
  0xd7   :  { %v138_v15 = vmax.f32 %v134_v12, 0.0  ;;  %v129_v16 = vadd.f32 %v128_v14, %v44_v13 }
  0xd9   :  { %v137_v17 = vmax.f32 %v129_v16, 0.0  ;;  %291 = vmatprep.subr.msk.mxu1 %vm58_vm0, %v138_v15 }
  0xda   :  { %292 = vmatpush3.msk.msra.mxu1 %vm58_vm0, %v138_v15 }
  0xdb   :  { %293 = vmatprep.subr.mxu1 %v137_v17 }
  0xdc   :  { %294 = vmatpush3.msra.mxu1 %v137_v17 }
  0xdd   :  { %296 = vmatmul.mubr.msk.f32.vlgmr.msra.gmra.mxu1 %vm51_vm1, %v140_v18 }
 0x19d   :  { %v297_v21 = vpop.f32.mrf.mxu1 }
 0x19e   :  { %v234_v22 = vadd.f32 %v297_v21, %v151_v20 }
 0x19f   :  { %v228_v23 = vpop.f32.mrf.mxu1 }
 0x1a0   :  { %v275_v24 = vmul.f32 -1.442695, %v234_v22  ;;  %v229_v25 = vadd.f32 %v228_v23, %v146_v19 }
 0x1a2   :  { %305 = vpow2.f32 %v275_v24  ;;  %v274_v26 = vmul.f32 -1.442695, %v229_v25 }
 0x1a4   :  { %307 = vpow2.f32 %v274_v26 }
 0x1af   :  { %v306_v27 = vpop.eup %305 }
 0x1b0   :  { %v244_v28 = vadd.f32 1.0, %v306_v27 }
 0x1b1   :  { %v308_v29 = vpop.eup %307 }
 0x1b2   :  { %309 = vrcp.f32 %v244_v28  ;;  %v243_v30 = vadd.f32 1.0, %v308_v29 }
 0x1b4   :  { %311 = vrcp.f32 %v243_v30 }
 0x1bf   :  { %v310_v31 = vpop.eup %309 }
 0x1c0   :  { %250 = vst [vmem:[#allocation5 + $0x8] sm:$0x3] %v310_v31 }
 0x1c1   :  { %v312_v32 = vpop.eup %311 }
 0x1c2   :  { %249 = vst [vmem:[#allocation5] sm:$0xff] %v312_v32 }
 0x1c3   :  { %344 = shalt.err (!%p341_p9)
}
 0x1c4   :  { %262 = dma.vmem_to_hbm [thread:$0]  %s257_s4, 256, %s441_s5, [#allocation4], %s358_s21, %s358_s21, %s359_s22  }
 0x1c5   :  { %355 = dma.done.wait [#allocation4], 256  }
 0x1c6   :  { %356 = vsyncadd [#allocation4], 4294967040 }
 0x1c7   :  { %266 = vsyncpa [#allocation3], 1 }
 0x1c8   :  { %267 = vsyncpa [#allocation4], 1 }

</bundles_post_ra>
